<compile_context>
chip_gen: v6e
topology: v6e:2x2x1
jax: 0.10.0
libtpu: 0.0.40
codegen_flags: <defaults>
</compile_context>

<pallas_src>
import functools

import jax
import jax.numpy as jnp
from jax.experimental import pallas as pl
from jax.experimental.pallas import tpu as pltpu


def _round_up(x, m):
    return ((x + m - 1) // m) * m


def _task_decoder_kernel(x_ref, w_x_ref, b_x_ref, w2_ref, out_ref, *, out_pad):
    x = x_ref[...]                                              # [TN, H]

    # Fused x-side matmul (single MXU pass):
    #   cols [0:out_pad]        -> bu head output + (b_out, b2) bias slab
    #   cols [out_pad:out_pad+H]-> td first-layer pre-activation (+ b1)
    t = jnp.dot(x, w_x_ref[...], preferred_element_type=jnp.float32)
    t = t + b_x_ref[...]                                        # f32 bias add

    slab = t[:, :out_pad]                                       # [TN, OUT_PAD] f32
    h = jnp.maximum(t[:, out_pad:], 0.0)                        # [TN, H]       f32

    # Second (td) matmul accumulated into the padded, lane-dense slab.
    slab = slab + jnp.dot(h.astype(w2_ref.dtype), w2_ref[...],
                          preferred_element_type=jnp.float32)
    out_ref[...] = slab.astype(out_ref.dtype)


def task_decoder_pallas(x, positions, params, *,
                        compute_dtype=jnp.float32, tile_n=512):
    """x: [N, H].  positions unused (see module-level note)."""
    del positions
    w_out, b_out, w1, b1, w2, b2 = params
    n, h = x.shape
    out_dim = w_out.shape[1]
    td_dim = w2.shape[1]                     # 6
    out_pad = max(128, _round_up(out_dim + td_dim, 128))

    # ---------- one-time weight packing (layout plumbing, outside kernel) ----------
    f32 = jnp.float32
    # bu head weight padded into lane-dense [H, OUT_PAD] (cols 0:out_dim).
    w_bu_pad = jnp.zeros((h, out_pad), f32).at[:, :out_dim].set(w_out.astype(f32))
    # td second-layer weight padded into cols out_dim:out_dim+td_dim.
    w2_pad = (jnp.zeros((h, out_pad), f32)
              .at[:, out_dim:out_dim + td_dim].set(w2.astype(f32)))
    # Fused x-side weight: [H, OUT_PAD + H]   (output-slab part | td layer-1 part)
    w_x = jnp.concatenate([w_bu_pad, w1.astype(f32)], axis=1)
    # Fused bias: slab part carries b_out and b2 (both purely additive),
    # tail carries b1.  Kept in f32 regardless of compute_dtype.
    b_slab = (jnp.zeros((1, out_pad), f32)
              .at[:, :out_dim].set(b_out.reshape(1, -1).astype(f32))
              .at[:, out_dim:out_dim + td_dim].set(b2.reshape(1, -1).astype(f32)))
    b_x = jnp.concatenate([b_slab, b1.reshape(1, -1).astype(f32)], axis=1)

    # Matmul operand dtype (accumulation is always f32 via preferred_element_type).
    w_x_c = w_x.astype(compute_dtype)
    w2_c = w2_pad.astype(compute_dtype)
    x_c = x.astype(compute_dtype)

    # ---------- tiling over the node dimension ----------
    tn = _round_up(min(tile_n, _round_up(n, 8)), 8)
    n_pad = _round_up(n, tn)
    if n_pad != n:
        x_c = jnp.pad(x_c, ((0, n_pad - n), (0, 0)))
    grid = (n_pad // tn,)

    in_specs = [
        pl.BlockSpec((tn, h), lambda i: (i, 0)),              # x tile (pipelined)
        pl.BlockSpec((h, out_pad + h), lambda i: (0, 0)),     # fused weight (resident)
        pl.BlockSpec((1, out_pad + h), lambda i: (0, 0)),     # fused bias   (resident)
        pl.BlockSpec((h, out_pad), lambda i: (0, 0)),         # w2 padded    (resident)
    ]
    out_specs = pl.BlockSpec((tn, out_pad), lambda i: (i, 0))  # lane-dense slab

    # ---------- VMEM budget (safe across v5e/v6e/v7x) ----------
    isz = jnp.dtype(compute_dtype).itemsize
    vmem_need = ((h * (out_pad + h) + h * out_pad) * isz       # resident weights
                 + (out_pad + h) * 4                           # fused bias
                 + 2 * tn * h * isz                            # double-buffered x
                 + 2 * tn * out_pad * 4                        # double-buffered out
                 + 4 * tn * (out_pad + h) * 4)                 # intermediate headroom
    vmem_limit = int(min(max(vmem_need + (4 << 20), 16 << 20), 48 << 20))

    cost = pl.CostEstimate(
        flops=2 * n_pad * h * (out_pad + h) + 2 * n_pad * h * out_pad,
        transcendentals=0,
        bytes_accessed=(x_c.size * isz
                        + (w_x_c.size + w2_c.size) * isz
                        + b_x.size * 4
                        + n_pad * out_pad * 4),
    )

    out_slab = pl.pallas_call(
        functools.partial(_task_decoder_kernel, out_pad=out_pad),
        out_shape=jax.ShapeDtypeStruct((n_pad, out_pad), jnp.float32),
        grid=grid,
        in_specs=in_specs,
        out_specs=out_specs,
        compiler_params=pltpu.CompilerParams(
            dimension_semantics=("parallel",),
            vmem_limit_bytes=vmem_limit,
        ),
        cost_estimate=cost,
    )(x_c, w_x_c, b_x, w2_c)

    y_bu = out_slab[:n, :out_dim].astype(x.dtype)
    y_td = out_slab[:n, out_dim:out_dim + td_dim].astype(x.dtype)
    return y_bu, y_td


def init_params(key, hidden_dim, output_dim):
    """Deterministic synthetic init (PyTorch-Linear-like uniform ranges).
    Weights are stored transposed: [in_features, out_features]."""
    ks = jax.random.split(key, 6)

    def lin(kw, kb, fan_in, fan_out):
        bound = 1.0 / jnp.sqrt(fan_in)
        w = jax.random.uniform(kw, (fan_in, fan_out), jnp.float32, -bound, bound)
        b = jax.random.uniform(kb, (1, fan_out), jnp.float32, -bound, bound)
        return w, b

    w_out, b_out = lin(ks[0], ks[1], hidden_dim, output_dim)   # mlp_bu_o2out
    w1, b1 = lin(ks[2], ks[3], hidden_dim, hidden_dim)         # mlp_td_e2s[0]
    w2, b2 = lin(ks[4], ks[5], hidden_dim, 6)                  # mlp_td_e2s[2]
    return (w_out, b_out, w1, b1, w2, b2)


def task_decoder_ref(x, params):
    w_out, b_out, w1, b1, w2, b2 = params
    y_bu = x @ w_out + b_out
    y_td = jnp.maximum(x @ w1 + b1, 0.0) @ w2 + b2
    return y_bu, y_td


if __name__ == "__main__":
    hidden_dim = 32
    output_dim = 4
    num_nodes = 8

    key = jax.random.PRNGKey(0)
    k_x, k_pos, k_p = jax.random.split(key, 3)

    x = jax.random.normal(k_x, (num_nodes, hidden_dim), jnp.float32)
    positions = jax.random.normal(k_pos, (num_nodes, 2), jnp.float32)  # unused
    params = init_params(k_p, hidden_dim, output_dim)

    # f32 path, tiny N (single tile).
    y_bu, y_td = task_decoder_pallas(x, positions, params)
    jax.block_until_ready((y_bu, y_td))

    y_bu_ref, y_td_ref = task_decoder_ref(x, params)
    assert y_bu.shape == (num_nodes, output_dim)
    assert y_td.shape == (num_nodes, 6)
    assert jnp.allclose(y_bu, y_bu_ref, atol=1e-5, rtol=1e-5)
    assert jnp.allclose(y_td, y_td_ref, atol=1e-5, rtol=1e-5)

    # bf16-operand / f32-accumulate path with a larger, non-tile-multiple N
    # to exercise the grid, padding and resident-weight pipeline.
    n2 = 1000
    x2 = jax.random.normal(jax.random.PRNGKey(1), (n2, hidden_dim), jnp.float32)
    yb2, yt2 = task_decoder_pallas(x2, None, params,
                                   compute_dtype=jnp.bfloat16, tile_n=512)
    jax.block_until_ready((yb2, yt2))
    yb2_ref, yt2_ref = task_decoder_ref(x2, params)
    assert yb2.shape == (n2, output_dim) and yt2.shape == (n2, 6)
    assert jnp.allclose(yb2, yb2_ref, atol=1e-1, rtol=1e-1)
    assert jnp.allclose(yt2, yt2_ref, atol=1e-1, rtol=1e-1)

    print("KERNEL_OK")
</pallas_src>

<mosaic_0001>
module attributes {stable_mosaic.version = 11 : i64} {
  func.func @_task_decoder_kernel(%arg0: i32, %arg1: memref<8x32xf32, #tpu.memory_space<vmem>>, %arg2: memref<32x160xf32, #tpu.memory_space<vmem>>, %arg3: memref<1x160xf32, #tpu.memory_space<vmem>>, %arg4: memref<32x128xf32, #tpu.memory_space<vmem>>, %arg5: memref<8x128xf32, #tpu.memory_space<vmem>>) attributes {dimension_semantics = [#tpu.dimension_semantics<parallel>], iteration_bounds = array<i64: 1>, scalar_prefetch = 0 : i64, scratch_operands = 0 : i64, tpu.core_type = #tpu.core_type<tc>, window_params = [{transform_indices = @transform_0, window_bounds = array<i64: 8, 32>}, {pipeline_mode = #tpu.pipeline_mode<synchronous>, transform_indices = @transform_1, window_bounds = array<i64: 32, 160>}, {pipeline_mode = #tpu.pipeline_mode<synchronous>, transform_indices = @transform_2, window_bounds = array<i64: 1, 160>}, {pipeline_mode = #tpu.pipeline_mode<synchronous>, transform_indices = @transform_3, window_bounds = array<i64: 32, 128>}, {transform_indices = @transform_4, window_bounds = array<i64: 8, 128>}]} {
    %c0 = arith.constant 0 : index
    %c0_0 = arith.constant 0 : index
    %0 = vector.load %arg1[%c0, %c0_0] : memref<8x32xf32, #tpu.memory_space<vmem>>, vector<8x32xf32>
    %c0_1 = arith.constant 0 : index
    %c0_2 = arith.constant 0 : index
    %1 = vector.load %arg2[%c0_1, %c0_2] : memref<32x160xf32, #tpu.memory_space<vmem>>, vector<32x160xf32>
    %cst = arith.constant dense<0.000000e+00> : vector<8x160xf32>
    %2 = tpu.matmul %0, %1, %cst {dimension_numbers = #tpu.dot_dimension_numbers<[1], [0], [0], [1], [0, 0, 1, 1], [], []>} : vector<8x32xf32>, vector<32x160xf32>, vector<8x160xf32> -> vector<8x160xf32>
    %c0_3 = arith.constant 0 : index
    %c0_4 = arith.constant 0 : index
    %3 = vector.load %arg3[%c0_3, %c0_4] : memref<1x160xf32, #tpu.memory_space<vmem>>, vector<1x160xf32>
    %4 = vector.broadcast %3 : vector<1x160xf32> to vector<8x160xf32>
    %5 = arith.addf %2, %4 : vector<8x160xf32>
    %6 = vector.extract_strided_slice %5 {offsets = [0, 0], sizes = [8, 128], strides = [1, 1]} : vector<8x160xf32> to vector<8x128xf32>
    %7 = vector.extract_strided_slice %5 {offsets = [0, 128], sizes = [8, 32], strides = [1, 1]} : vector<8x160xf32> to vector<8x32xf32>
    %cst_5 = arith.constant 0.000000e+00 : f32
    %8 = vector.broadcast %cst_5 : f32 to vector<8x32xf32>
    %9 = arith.maximumf %7, %8 : vector<8x32xf32>
    %c0_6 = arith.constant 0 : index
    %c0_7 = arith.constant 0 : index
    %10 = vector.load %arg4[%c0_6, %c0_7] : memref<32x128xf32, #tpu.memory_space<vmem>>, vector<32x128xf32>
    %cst_8 = arith.constant dense<0.000000e+00> : vector<8x128xf32>
    %11 = tpu.matmul %9, %10, %cst_8 {dimension_numbers = #tpu.dot_dimension_numbers<[1], [0], [0], [1], [0, 0, 1, 1], [], []>} : vector<8x32xf32>, vector<32x128xf32>, vector<8x128xf32> -> vector<8x128xf32>
    %12 = arith.addf %6, %11 : vector<8x128xf32>
    %c0_9 = arith.constant 0 : index
    %c0_10 = arith.constant 0 : index
    %13 = vector.load %arg5[%c0_9, %c0_10] : memref<8x128xf32, #tpu.memory_space<vmem>>, vector<8x128xf32>
    tpu.vector_store %arg5[%c0_9, %c0_10], %12 {strides = array<i32>} : memref<8x128xf32, #tpu.memory_space<vmem>>, vector<8x128xf32>,
    return
  }
  func.func @transform_0(%arg0: i32) -> (i32, i32) {
    %c0_i32 = arith.constant 0 : i32
    %c0_i32_0 = arith.constant 0 : i32
    return %arg0, %c0_i32 : i32, i32
  }
  func.func @transform_1(%arg0: i32) -> (i32, i32) {
    %c0_i32 = arith.constant 0 : i32
    %c0_i32_0 = arith.constant 0 : i32
    %c0_i32_1 = arith.constant 0 : i32
    return %c0_i32, %c0_i32_0 : i32, i32
  }
  func.func @transform_2(%arg0: i32) -> (i32, i32) {
    %c0_i32 = arith.constant 0 : i32
    %c0_i32_0 = arith.constant 0 : i32
    %c0_i32_1 = arith.constant 0 : i32
    return %c0_i32, %c0_i32_0 : i32, i32
  }
  func.func @transform_3(%arg0: i32) -> (i32, i32) {
    %c0_i32 = arith.constant 0 : i32
    %c0_i32_0 = arith.constant 0 : i32
    %c0_i32_1 = arith.constant 0 : i32
    return %c0_i32, %c0_i32_0 : i32, i32
  }
  func.func @transform_4(%arg0: i32) -> (i32, i32) {
    %c0_i32 = arith.constant 0 : i32
    %c0_i32_0 = arith.constant 0 : i32
    return %arg0, %c0_i32 : i32, i32
  }
}

</mosaic_0001>

<bundles_post_ra>
// kernel: tpu_custom_call.1
= control target key start
LH: loop header
LB: loop body
LE: loop exit
PB: predicated region body
PF: predicated region fallthrough
CT: control target
= control target key end

     0   :  { %9 = vsyncpa [#allocation3], 0  ;;  %s415_s0 = inlined_call_operand.hbm [shape: f32[8,32], index: 0, kind: input, shape index: {}]   ;;  %s416_s1 = inlined_call_operand.hbm [shape: f32[32,160], index: 1, kind: input, shape index: {}]   ;;  %s417_s2 = inlined_call_operand.vmem [shape: f32[1,160], index: 2, kind: input, shape index: {}]   ;;  %s418_s3 = inlined_call_operand.hbm [shape: f32[32,128], index: 3, kind: input, shape index: {}]   ;;  %s419_s4 = inlined_call_operand.hbm [shape: f32[8,128], index: 4, kind: output, shape index: {}]  }
   0x1   :  { %10 = vsyncpa [#allocation6], 0 }
   0x2   :  { %11 = vsyncpa [#allocation4], 0  ;;  %s363_s15 = smov [#allocation5]  }
   0x3   :  { %s27_s16 = sshll.u32 %s363_s15, 4  ;;  %s28_s16 = int_to_ptr.vmem [resolvable:$true] %s27_s16 }
   0x4   :  { %s285_s17 = scalar_lea.vmem %s28_s16, 1024  ;;  %p290_p1 = scmp.lt.s32.totalorder %s28_s16, %s28_s16 }
   0x5   :  { %p286_p0 = scmp.ne.s32.totalorder %s28_s16, %s285_s17  ;;  %p291_p2 = scmp.lt.s32.totalorder %s285_s17, %s285_s17 }
   0x7   :  { %p292_p3 = por %p291_p2, %p290_p1 }
   0x9   :  { %p293_p4 = pnand %p292_p3, %p286_p0 }
   0xb   :  { %296 = shalt.err (!%p293_p4)
}
   0xc   :  { %s364_s18 = smov 256   ;;  %s365_s19 = smov 16  }
   0xd   :  { %33 = dma.hbm_to_vmem [thread:$0]  %s416_s1, 1024, %s28_s16, [#allocation6], %s364_s18, %s364_s18, %s365_s19  }
   0xe   :  { %s366_s22 = smov [#allocation2]   ;;  %s367_s24 = smov [#allocation7]  }
   0xf   :  { %s18_s23 = sshll.u32 %s366_s22, 4  ;;  %s41_s25 = sshll.u32 %s367_s24, 4  ;;  %s19_s23 = int_to_ptr.vmem [resolvable:$true] %s18_s23  ;;  %s42_s25 = int_to_ptr.vmem [resolvable:$true] %s41_s25 }
  0x10   :  { %s305_s26 = scalar_lea.vmem %s19_s23, 128  ;;  %p310_p6 = scmp.lt.s32.totalorder %s19_s23, %s19_s23 }
  0x11   :  { %p306_p5 = scmp.ne.s32.totalorder %s19_s23, %s305_s26  ;;  %p311_p7 = scmp.lt.s32.totalorder %s305_s26, %s305_s26 }
  0x13   :  { %p312_p8 = por %p311_p7, %p310_p6 }
  0x15   :  { %p313_p9 = pnand %p312_p8, %p306_p5 }
  0x17   :  { %316 = shalt.err (!%p313_p9)
}
  0x18   :  { %21 = dma.hbm_to_vmem [thread:$0]  %s415_s0, 128, %s19_s23, [#allocation3]  }
  0x19   :  { %s325_s29 = scalar_lea.vmem %s42_s25, 512  ;;  %p330_p11 = scmp.lt.s32.totalorder %s42_s25, %s42_s25 }
  0x1a   :  { %p326_p10 = scmp.ne.s32.totalorder %s42_s25, %s325_s29  ;;  %p331_p12 = scmp.lt.s32.totalorder %s325_s29, %s325_s29 }
  0x1c   :  { %p332_p13 = por %p331_p12, %p330_p11 }
  0x1e   :  { %p333_p0 = pnand %p332_p13, %p326_p10 }
  0x20   :  { %336 = shalt.err (!%p333_p0)
}
  0x21   :  { %s368_s1 = smov 128   ;;  %s369_s30 = smov 8  }
  0x22   :  { %47 = dma.hbm_to_vmem [thread:$0]  %s418_s3, 512, %s42_s25, [#allocation6], %s368_s1, %s368_s1, %s369_s30  }
  0x23   :  { %357 = dma.done.wait [#allocation3], 128  }
  0x24   :  { %358 = vsyncadd [#allocation3], 4294967168 }
  0x25   :  { %359 = dma.done.wait [#allocation6], 1536  }
  0x26   :  { %360 = vsyncadd [#allocation6], 4294965760  ;;  %v370_v0 = vmov 0.0   ;;  %v65_v1 = vld [vmem:[#allocation5 + $0x38] sm:$0xff]  ;;  %v64_v2 = vld [vmem:[#allocation5 + $0x30] sm:$0xff]  ;;  %vm78_vm0 = vcmask 261120   ;;  %v68_v14 = vlaneseq }
  0x27   :  { %146 = vmatprep.mubr.f32.mxu0 %v370_v0  ;;  %256 = vmatprep.subr.mxu1 %v370_v0  ;;  %v63_v3 = vld [vmem:[#allocation5 + $0x28] sm:$0xff]  ;;  %v62_v4 = vld [vmem:[#allocation5 + $0x20] sm:$0xff]  ;;  %v61_v5 = vld [vmem:[#allocation5 + $0x18] sm:$0xff]  ;;  %vm371_vm1 = vmmov 0   ;;  %s372_s7 = smov [#allocation8]  }
  0x28   :  { %106 = vmatprep.subr.mxu0 %v65_v1  ;;  %v60_v6 = vld [vmem:[#allocation5 + $0x10] sm:$0xff]  ;;  %v59_v7 = vld [vmem:[#allocation5 + $0x8] sm:$0xff]  ;;  %v58_v8 = vld [vmem:[#allocation5] sm:$0xff]  ;;  %264 = vmatprep.mubr.msk.f32.mxu1 %vm371_vm1, %v370_v0  ;;  %v69_v15 = vshrl.u32 %v68_v14, 7  ;;  %s239_s8 = sshll.u32 %s372_s7, 4  ;;  %s240_s8 = int_to_ptr.vmem [resolvable:$true] %s239_s8 }
  0x29   :  { %107 = vmatpush1.msra.mxu0 %v64_v2  ;;  %v57_v9 = vld [vmem:[#allocation2] sm:$0xff]  ;;  %v156_v11 = vld [vmem:[#allocation7 + $0x10] sm:$0xff]  ;;  %v155_v12 = vld [vmem:[#allocation7 + $0x8] sm:$0xff]  ;;  %s337_s9 = scalar_lea.vmem %s240_s8, 128  ;;  %p342_p2 = scmp.lt.s32.totalorder %s240_s8, %s240_s8 }
  0x2a   :  { %108 = vmatprep.subr.mxu0 %v63_v3  ;;  %v157_v10 = vld [vmem:[#allocation7 + $0x18] sm:$0xff]  ;;  %v154_v13 = vld [vmem:[#allocation7] sm:$0xff]  ;;  %v74_v16 = vsub.s32 1, %v69_v15  ;;  %v70_v23 = vsub.s32 0, %v69_v15  ;;  %p338_p1 = scmp.ne.s32.totalorder %s240_s8, %s337_s9  ;;  %p343_p3 = scmp.lt.s32.totalorder %s337_s9, %s337_s9 }
  0x2b   :  { %109 = vmatpush1.msra.mxu0 %v62_v4  ;;  %257 = vmatpush3.msra.mxu1 %v157_v10  ;;  %v66_v17 = vld [vmem:[%s417_s2] sm:$0x3] }
  0x2c   :  { %110 = vmatprep.subr.mxu0 %v61_v5  ;;  %258 = vmatprep.subr.mxu1 %v370_v0  ;;  %v75_v18 = vrot.slane %v66_v17, %v74_v16  ;;  %v71_v24 = vrot.slane %v66_v17, %v70_v23  ;;  %p344_p4 = por %p343_p3, %p342_p2 }
  0x2d   :  { %111 = vmatpush1.msra.mxu0 %v60_v6  ;;  %259 = vmatpush3.msra.mxu1 %v156_v11 }
  0x2e   :  { %112 = vmatprep.subr.mxu0 %v59_v7  ;;  %260 = vmatprep.subr.mxu1 %v370_v0  ;;  %p345_p5 = pnand %p344_p4, %p338_p1 }
  0x2f   :  { %113 = vmatpush1.msra.mxu0 %v58_v8  ;;  %261 = vmatpush3.msra.mxu1 %v155_v12 }
  0x30   :  { %249 = vmatmul.mubr.msk.f32.vlgmr.msra.gmra.mxu0 %vm78_vm0, %v57_v9  ;;  %262 = vmatprep.subr.mxu1 %v370_v0 }
  0x31   :  { %263 = vmatpush3.msra.mxu1 %v154_v13 }
  0xf0   :  { %v148_v19 = vpop.f32.mrf.mxu0 }
  0xf1   :  { %v149_v25 = vadd.f32 %v148_v19, %v71_v24 }
  0xf2   :  { %v150_v20 = vpop.f32.mrf.mxu0 }
  0xf3   :  { %v151_v21 = vadd.f32 %v150_v20, %v75_v18 }
  0xf5   :  { %v153_v22 = vmax.f32 %v151_v21, 0.0 }
  0xf7   :  { %265 = vmatmul.mubr.msk.f32.vlgmr.msra.gmra.mxu1 %vm78_vm0, %v153_v22 }
 0x1b7   :  { %v227_v26 = vpop.f32.mrf.mxu1 }
 0x1b8   :  { %v231_v27 = vadd.f32 %v227_v26, %v149_v25 }
 0x1b9   :  { %v266_v28 = vpop.f32.mrf.mxu1 }
 0x1ba   :  { %232 = vst [vmem:[#allocation8] sm:$0xff] %v231_v27 }
 0x1bb   :  { %348 = shalt.err (!%p345_p5)
}
 0x1bc   :  { %242 = dma.vmem_to_hbm [thread:$0]  %s240_s8, 128, %s419_s4, [#allocation4]  }
 0x1bd   :  { %361 = dma.done.wait [#allocation4], 128  }
 0x1be   :  { %362 = vsyncadd [#allocation4], 4294967168 }
 0x1bf   :  { %246 = vsyncpa [#allocation3], 1 }
 0x1c0   :  { %247 = vsyncpa [#allocation6], 1 }
 0x1c1   :  { %248 = vsyncpa [#allocation4], 1 }

</bundles_post_ra>
